<compile_context>
chip_gen: v6e
topology: v6e:2x2x1
jax: 0.10.0
libtpu: 0.0.40
codegen_flags: <defaults>
</compile_context>

<pallas_src>
import functools

import jax
import jax.numpy as jnp
from jax.experimental import pallas as pl
from jax.experimental.pallas import tpu as pltpu

NEG_SLOPE = 0.01   # nn.LeakyReLU default
BN_EPS = 1e-5      # nn.BatchNorm2d default


def _round_up(a, b):
    return ((a + b - 1) // b) * b


# ----------------------------------------------------------------------------
# Pallas kernel: fused (rows x 4Cin) @ (4Cin x 4Cout) matmul
#                + per-channel scale/shift (folded BN or bias) + LeakyReLU
# ----------------------------------------------------------------------------
def _fused_deconv_kernel(x_ref, w_ref, s_ref, t_ref, o_ref):
    acc = jnp.dot(x_ref[...], w_ref[...], preferred_element_type=jnp.float32)
    acc = acc * s_ref[...] + t_ref[...]          # f32 epilogue
    o_ref[...] = jnp.where(acc >= 0, acc, NEG_SLOPE * acc).astype(o_ref.dtype)


# ----------------------------------------------------------------------------
# Weight repacking: ConvTranspose2d weight (Cin, Cout, 3, 3) -> (4*Cin, 4*Cout)
# ----------------------------------------------------------------------------
def _build_parity_weight(w):
    """Row block tap=2*di+dj multiplies input pixel (m+di, n+dj); column block
    p=2*py+px produces output pixel (2m+py, 2n+px)."""
    cin, cout = w.shape[0], w.shape[1]
    wb = jnp.zeros((4 * cin, 4 * cout), w.dtype)
    for py in (0, 1):
        for px in (0, 1):
            p = 2 * py + px
            for ky in range(3):
                for kx in range(3):
                    # output (2m+py) = 2i - 1 + ky  =>  i = m + (py+1-ky)/2
                    if (py + 1 - ky) % 2 or (px + 1 - kx) % 2:
                        continue
                    di = (py + 1 - ky) // 2
                    dj = (px + 1 - kx) // 2
                    if not (0 <= di <= 1 and 0 <= dj <= 1):
                        continue
                    tap = 2 * di + dj
                    wb = wb.at[tap * cin:(tap + 1) * cin,
                               p * cout:(p + 1) * cout].set(w[:, :, ky, kx])
    return wb


# ----------------------------------------------------------------------------
# Module forward (NCHW in / NCHW out, matching the PyTorch module)
# ----------------------------------------------------------------------------
def upsample_forward(x_nchw, params, *, bn=True, tm=256):
    x = jnp.transpose(x_nchw, (0, 2, 3, 1)).astype(jnp.float32)  # NHWC
    B, H, W, Cin = x.shape
    w = params["weight"]                  # (Cin, Cout, 3, 3) ConvTranspose2d layout
    Cout = w.shape[1]
    K, C4 = 4 * Cin, 4 * Cout

    # im2col-lite: the 2x2 input neighbourhood of every output 2x2 block.
    # Pad one zero row/col on bottom/right (contributions from i=H / j=W are 0).
    xp = jnp.pad(x, ((0, 0), (0, 1), (0, 1), (0, 0)))
    slabs = [xp[:, di:di + H, dj:dj + W, :] for di in (0, 1) for dj in (0, 1)]
    X = jnp.concatenate(slabs, axis=-1).reshape(B * H * W, K)

    wb = _build_parity_weight(w)          # (4*Cin, 4*Cout)

    # Fold BatchNorm (eval) or conv bias into per-channel scale/shift.
    if bn:
        scale = params["gamma"] * jax.lax.rsqrt(params["running_var"] + BN_EPS)
        shift = params["beta"] - params["running_mean"] * scale
    else:
        scale = jnp.ones((Cout,), jnp.float32)
        shift = params["bias"]
    scale4 = jnp.tile(scale, 4).reshape(1, C4).astype(jnp.float32)
    shift4 = jnp.tile(shift, 4).reshape(1, C4).astype(jnp.float32)

    # Row tiling with padded last block (no giant single-block fallback).
    N = B * H * W
    tm = _round_up(max(8, min(tm, _round_up(N, 8))), 8)
    n_pad = _round_up(N, tm)
    x_bf16 = X.astype(jnp.bfloat16)
    if n_pad != N:
        x_bf16 = jnp.pad(x_bf16, ((0, n_pad - N), (0, 0)))
    w_bf16 = wb.astype(jnp.bfloat16)

    out = pl.pallas_call(
        _fused_deconv_kernel,
        out_shape=jax.ShapeDtypeStruct((n_pad, C4), jnp.float32),
        grid=(n_pad // tm,),
        in_specs=[
            pl.BlockSpec((tm, K), lambda i: (i, 0)),
            pl.BlockSpec((K, C4), lambda i: (0, 0)),
            pl.BlockSpec((1, C4), lambda i: (0, 0)),
            pl.BlockSpec((1, C4), lambda i: (0, 0)),
        ],
        out_specs=pl.BlockSpec((tm, C4), lambda i: (i, 0)),
        compiler_params=pltpu.CompilerParams(dimension_semantics=("parallel",)),
    )(x_bf16, w_bf16, scale4, shift4)

    # (N, 4*Cout) -> (B, 2H, 2W, Cout) -> NCHW
    y = out[:N].reshape(B, H, W, 2, 2, Cout)
    y = jnp.transpose(y, (0, 1, 3, 2, 4, 5)).reshape(B, 2 * H, 2 * W, Cout)
    return jnp.transpose(y, (0, 3, 1, 2))


# ----------------------------------------------------------------------------
# Pure-JAX reference (independent path via lhs-dilated convolution), f32.
# ----------------------------------------------------------------------------
def ref_upsample(x_nchw, params, *, bn=True):
    w = params["weight"]                                    # (Cin, Cout, 3, 3)
    wf = jnp.flip(jnp.transpose(w, (1, 0, 2, 3)), axis=(2, 3))  # (Cout, Cin, 3, 3)
    dn = jax.lax.conv_dimension_numbers(x_nchw.shape, wf.shape,
                                        ("NCHW", "OIHW", "NCHW"))
    y = jax.lax.conv_general_dilated(
        x_nchw, wf, window_strides=(1, 1), padding=[(1, 2), (1, 2)],
        lhs_dilation=(2, 2), dimension_numbers=dn,
        precision=jax.lax.Precision.HIGHEST)
    if bn:
        scale = params["gamma"] / jnp.sqrt(params["running_var"] + BN_EPS)
        shift = params["beta"] - params["running_mean"] * scale
    else:
        scale = jnp.ones_like(params["bias"])
        shift = params["bias"]
    y = y * scale[None, :, None, None] + shift[None, :, None, None]
    return jnp.where(y >= 0, y, NEG_SLOPE * y)


# ----------------------------------------------------------------------------
# Deterministic synthetic parameters
# ----------------------------------------------------------------------------
def init_upsample_params(key, cin, cout, *, bn=True):
    k1, k2, k3, k4, k5, k6 = jax.random.split(key, 6)
    p = {"weight": 0.1 * jax.random.normal(k1, (cin, cout, 3, 3), jnp.float32)}
    if bn:
        p["gamma"] = 1.0 + 0.1 * jax.random.normal(k2, (cout,), jnp.float32)
        p["beta"] = 0.1 * jax.random.normal(k3, (cout,), jnp.float32)
        p["running_mean"] = 0.1 * jax.random.normal(k4, (cout,), jnp.float32)
        p["running_var"] = 0.5 + jax.random.uniform(k5, (cout,), jnp.float32)
    else:
        p["bias"] = 0.1 * jax.random.normal(k6, (cout,), jnp.float32)
    return p


if __name__ == "__main__":
    key = jax.random.PRNGKey(0)
    B, Cin, Cout, H, W = 2, 16, 32, 16, 20   # W=20 exercises the padded last tile

    kx, kp_bn, kp_nobn = jax.random.split(key, 3)
    x = jax.random.normal(kx, (B, Cin, H, W), jnp.float32)

    for bn, kp in ((True, kp_bn), (False, kp_nobn)):
        params = init_upsample_params(kp, Cin, Cout, bn=bn)
        fwd = jax.jit(functools.partial(upsample_forward, bn=bn, tm=256))
        y = jax.block_until_ready(fwd(x, params))
        assert y.shape == (B, Cout, 2 * H, 2 * W), y.shape

        y_ref = ref_upsample(x, params, bn=bn)
        err = float(jnp.max(jnp.abs(y - y_ref)))
        assert err < 5e-2, f"bn={bn}: max abs err {err}"

    print("KERNEL_OK")
</pallas_src>

<mosaic_0001>
module attributes {stable_mosaic.version = 11 : i64} {
  func.func @_fused_deconv_kernel(%arg0: i32, %arg1: memref<256x64xbf16, #tpu.memory_space<vmem>>, %arg2: memref<64x128xbf16, #tpu.memory_space<vmem>>, %arg3: memref<1x128xf32, #tpu.memory_space<vmem>>, %arg4: memref<1x128xf32, #tpu.memory_space<vmem>>, %arg5: memref<256x128xf32, #tpu.memory_space<vmem>>) attributes {dimension_semantics = [#tpu.dimension_semantics<parallel>], iteration_bounds = array<i64: 3>, scalar_prefetch = 0 : i64, scratch_operands = 0 : i64, tpu.core_type = #tpu.core_type<tc>, window_params = [{transform_indices = @transform_0, window_bounds = array<i64: 256, 64>}, {pipeline_mode = #tpu.pipeline_mode<synchronous>, transform_indices = @transform_1, window_bounds = array<i64: 64, 128>}, {pipeline_mode = #tpu.pipeline_mode<synchronous>, transform_indices = @transform_2, window_bounds = array<i64: 1, 128>}, {pipeline_mode = #tpu.pipeline_mode<synchronous>, transform_indices = @transform_3, window_bounds = array<i64: 1, 128>}, {transform_indices = @transform_4, window_bounds = array<i64: 256, 128>}]} {
    %c0 = arith.constant 0 : index
    %c0_0 = arith.constant 0 : index
    %0 = vector.load %arg1[%c0, %c0_0] : memref<256x64xbf16, #tpu.memory_space<vmem>>, vector<256x64xbf16>
    %c0_1 = arith.constant 0 : index
    %c0_2 = arith.constant 0 : index
    %1 = vector.load %arg2[%c0_1, %c0_2] : memref<64x128xbf16, #tpu.memory_space<vmem>>, vector<64x128xbf16>
    %cst = arith.constant dense<0.000000e+00> : vector<256x128xf32>
    %2 = tpu.matmul %0, %1, %cst {dimension_numbers = #tpu.dot_dimension_numbers<[1], [0], [0], [1], [0, 0, 1, 1], [], []>} : vector<256x64xbf16>, vector<64x128xbf16>, vector<256x128xf32> -> vector<256x128xf32>
    %c0_3 = arith.constant 0 : index
    %c0_4 = arith.constant 0 : index
    %3 = vector.load %arg3[%c0_3, %c0_4] : memref<1x128xf32, #tpu.memory_space<vmem>>, vector<1x128xf32>
    %4 = vector.broadcast %3 : vector<1x128xf32> to vector<256x128xf32>
    %5 = arith.mulf %2, %4 : vector<256x128xf32>
    %c0_5 = arith.constant 0 : index
    %c0_6 = arith.constant 0 : index
    %6 = vector.load %arg4[%c0_5, %c0_6] : memref<1x128xf32, #tpu.memory_space<vmem>>, vector<1x128xf32>
    %7 = vector.broadcast %6 : vector<1x128xf32> to vector<256x128xf32>
    %8 = arith.addf %5, %7 : vector<256x128xf32>
    %cst_7 = arith.constant 0.000000e+00 : f32
    %9 = vector.broadcast %cst_7 : f32 to vector<256x128xf32>
    %10 = arith.cmpf oge, %8, %9 : vector<256x128xf32>
    %cst_8 = arith.constant 0.00999999977 : f32
    %11 = vector.broadcast %cst_8 : f32 to vector<256x128xf32>
    %12 = arith.mulf %11, %8 : vector<256x128xf32>
    %13 = arith.select %10, %8, %12 : vector<256x128xi1>, vector<256x128xf32>
    %c0_9 = arith.constant 0 : index
    %c0_10 = arith.constant 0 : index
    %14 = vector.load %arg5[%c0_9, %c0_10] : memref<256x128xf32, #tpu.memory_space<vmem>>, vector<256x128xf32>
    tpu.vector_store %arg5[%c0_9, %c0_10], %13 {strides = array<i32>} : memref<256x128xf32, #tpu.memory_space<vmem>>, vector<256x128xf32>,
    return
  }
  func.func @transform_0(%arg0: i32) -> (i32, i32) {
    %c0_i32 = arith.constant 0 : i32
    %c0_i32_0 = arith.constant 0 : i32
    return %arg0, %c0_i32 : i32, i32
  }
  func.func @transform_1(%arg0: i32) -> (i32, i32) {
    %c0_i32 = arith.constant 0 : i32
    %c0_i32_0 = arith.constant 0 : i32
    %c0_i32_1 = arith.constant 0 : i32
    return %c0_i32, %c0_i32_0 : i32, i32
  }
  func.func @transform_2(%arg0: i32) -> (i32, i32) {
    %c0_i32 = arith.constant 0 : i32
    %c0_i32_0 = arith.constant 0 : i32
    %c0_i32_1 = arith.constant 0 : i32
    return %c0_i32, %c0_i32_0 : i32, i32
  }
  func.func @transform_3(%arg0: i32) -> (i32, i32) {
    %c0_i32 = arith.constant 0 : i32
    %c0_i32_0 = arith.constant 0 : i32
    %c0_i32_1 = arith.constant 0 : i32
    return %c0_i32, %c0_i32_0 : i32, i32
  }
  func.func @transform_4(%arg0: i32) -> (i32, i32) {
    %c0_i32 = arith.constant 0 : i32
    %c0_i32_0 = arith.constant 0 : i32
    return %arg0, %c0_i32 : i32, i32
  }
}

</mosaic_0001>

<bundles_post_ra>
// kernel: tile.18
= control target key start
LH: loop header
LB: loop body
LE: loop exit
PB: predicated region body
PF: predicated region fallthrough
CT: control target
= control target key end

     0   :  { %s22_s0 = inlined_call_operand.vmem [shape: f32[32], index: 0, kind: input, shape index: {}]   ;;  %s23_s1 = inlined_call_operand.vmem [shape: f32[4,32], index: 1, kind: output, shape index: {}]  }
   0x1   :  { %v4_v0 = vld [vmem:[%s22_s0] ss:$0 sm:$0xff] }
   0x2   :  { %5 = vst [vmem:[%s23_s1] sm:$0xf] %v4_v0 }

// kernel: tile.19
= control target key start
LH: loop header
LB: loop body
LE: loop exit
PB: predicated region body
PF: predicated region fallthrough
CT: control target
= control target key end

     0   :  { %vm8_vm0 = vcmask 261120   ;;  %s40_s8 = smov 32   ;;  %s41_s9 = smov 64   ;;  %vm14_vm1 = vcmask 1048320   ;;  %vm20_vm2 = vcmask 785920   ;;  %vm26_vm3 = vcmask 523520   ;;  %s58_s0 = inlined_call_operand.vmem [shape: f32[4,32], index: 0, kind: input, shape index: {}]   ;;  %s59_s1 = inlined_call_operand.vmem [shape: f32[1,128], index: 1, kind: output, shape index: {}]  }
   0x1   :  { %v5_v0 = vld [vmem:[%s58_s0] sm:$0xf]  ;;  %s39_s0 = smov 96  }
   0x2   :  { %6 = vst [vmem:[#allocation1] sm:$0xf] %v5_v0 }
   0x9   :  { %v11_v1 = vld [vmem:[#allocation1 + $0x3] sm:$0x1]   ;;  %v23_v2 = vld [vmem:[#allocation1 + $0x1] sm:$0x1]   ;;  %v7_v3 = vld [vmem:[#allocation1] sm:$0x1]  }
   0xa   :  { %12 = vrot.lane.b32.xlu0 %v11_v1, %s39_s0  ;;  %24 = vrot.lane.b32.xlu1 %v23_v2, %s40_s8  ;;  %v17_v4 = vld [vmem:[#allocation1 + $0x2] sm:$0x1]   ;;  %9 = vst.msk [vmem:[#allocation0] sm:$0x1] %vm8_vm0, %v7_v3  }
   0xe   :  { %18 = vrot.lane.b32.xlu0 %v17_v4, %s41_s9 }
  0x7c   :  { %v13_v5 = vpop.permute.xlu0 %12   ;;  %v25_v6 = vpop.permute.xlu1 %24  }
  0x7d   :  { %15 = vst.msk [vmem:[#allocation0] sm:$0x1] %vm14_vm1, %v13_v5  }
  0x80   :  { %v19_v7 = vpop.permute.xlu0 %18  }
  0x81   :  { %21 = vst.msk [vmem:[#allocation0] sm:$0x1] %vm20_vm2, %v19_v7  }
  0x82   :  { %27 = vst.msk [vmem:[#allocation0] sm:$0x1] %vm26_vm3, %v25_v6  }
  0x89   :  { %v32_v8 = vld [vmem:[#allocation0] sm:$0x1] }
  0x8a   :  { %35 = vst [vmem:[%s59_s1] sm:$0x1] %v32_v8 }

// kernel: upsample_forward.1
= control target key start
LH: loop header
LB: loop body
LE: loop exit
PB: predicated region body
PF: predicated region fallthrough
CT: control target
= control target key end

     0   :  { %s996_s15 = smov 0   ;;  %s1171_s0 = inlined_call_operand.vmem [shape: bf16[768,64], index: 0, kind: input, shape index: {}]   ;;  %s1172_s1 = inlined_call_operand.vmem [shape: bf16[64,128], index: 1, kind: input, shape index: {}]   ;;  %s1173_s2 = inlined_call_operand.vmem [shape: f32[1,128], index: 2, kind: input, shape index: {}]   ;;  %s1174_s3 = inlined_call_operand.vmem [shape: f32[1,128], index: 3, kind: input, shape index: {}]   ;;  %s1175_s4 = inlined_call_operand.vmem [shape: f32[768,128], index: 4, kind: output, shape index: {}]  }
   0x1 LB: > { %s818_s16 = sadd.s32 4294967295, %s969_s15   ;;  %p822_p0 = scmp.ge.s32.totalorder %s969_s15, 1  ;;  %s969_s15 = sphi %s996_s15, %s14_s15  }
   0x2   : > { %p163_p1 = scmp.lt.s32.totalorder %s969_s15, 4 }
   0x4   : > { %p164_p2 = pnand %p822_p0, %p163_p1 }
   0x5   : > { %s823_s19 = sshll.u32 (!%p164_p2), %s818_s16, 5 }
   0x6   : > { %167 = sbr.rel (%p164_p2) target bundleno = 266 (0x10a), region = 36  ;;  %p190_p3 = scmp.lt.s32.totalorder (!%p164_p2), %s823_s19, 95 }
   0xb   : > { %v943_v0 = vld [vmem:[%s1172_s1 + $0x18] sm:$0xff]   ;;  %v944_v1 = vld [vmem:[%s1172_s1 + $0x10] sm:$0xff]   ;;  %s1177_s19 = smov (!%p190_p3, %s823_s19), 95  ;;  %v945_v2 = vld [vmem:[%s1172_s1 + $0x8] sm:$0xff]   ;;  %vm346_vm0 = vcmask 523264  }
   0xc   : > { %887 = vmatprep.subr.bf16.mxu0 %v943_v0  ;;  %927 = vmatprep.subr.bf16.mxu1 %v943_v0  ;;  %s824_s24 = sshll.u32 %s1177_s19, 2  ;;  %v946_v3 = vld [vmem:[%s1172_s1] sm:$0xff]   ;;  %s826_s8 = sshll.u32 %s1177_s19, 3 }
   0xd   : > { %888 = vmatpush3.bf16.msra.mxu0 %v943_v0  ;;  %931 = vmatpush3.bf16.msra.mxu1 %v943_v0  ;;  %s1022_s29 = scalar_lea.vmem %s1171_s0, %s824_s24  ;;  %v1059_v20 = vld [vmem:[%s1173_s2] ss:$0 sm:$0xff]  ;;  %s1076_s11 = scalar_lea.vmem %s1175_s4, %s826_s8 }
   0xe   : > { %889 = vmatprep.subr.bf16.mxu0 %v944_v1  ;;  %928 = vmatprep.subr.bf16.mxu1 %v944_v1  ;;  %v947_v4 = vld [vmem:[%s1022_s29] sm:$0xff]   ;;  %v949_v6 = vld [vmem:[%s1022_s29 + $0x8] sm:$0xff]   ;;  %v951_v8 = vld [vmem:[%s1022_s29 + $0x10] sm:$0xff]  }
   0xf   : > { %v948_v5 = vld [vmem:[%s1022_s29 + $0x40] sm:$0xff]   ;;  %895 = vmatprep.mubr.msk.bf16.mxu0 %vm346_vm0, %v947_v4  ;;  %v950_v7 = vld [vmem:[%s1022_s29 + $0x48] sm:$0xff]   ;;  %v952_v9 = vld [vmem:[%s1022_s29 + $0x50] sm:$0xff]  }
  0x10   : > { %911 = vmatprep.mubr.msk.bf16.mxu1 %vm346_vm0, %v948_v5  ;;  %v953_v10 = vld [vmem:[%s1022_s29 + $0x18] sm:$0xff]   ;;  %v955_v12 = vld [vmem:[%s1022_s29 + $0x20] sm:$0xff]   ;;  %v957_v14 = vld [vmem:[%s1022_s29 + $0x28] sm:$0xff]  }
  0x11   : > { %890 = vmatpush3.bf16.msra.mxu0 %v944_v1  ;;  %932 = vmatpush3.bf16.msra.mxu1 %v944_v1  ;;  %v954_v11 = vld [vmem:[%s1022_s29 + $0x58] sm:$0xff]   ;;  %v956_v13 = vld [vmem:[%s1022_s29 + $0x60] sm:$0xff]   ;;  %v958_v15 = vld [vmem:[%s1022_s29 + $0x68] sm:$0xff]  }
  0x12   : > { %891 = vmatprep.subr.bf16.mxu0 %v945_v2  ;;  %929 = vmatprep.subr.bf16.mxu1 %v945_v2  ;;  %v959_v16 = vld [vmem:[%s1022_s29 + $0x30] sm:$0xff]   ;;  %v961_v18 = vld [vmem:[%s1022_s29 + $0x38] sm:$0xff]   ;;  %v1064_v22 = vld [vmem:[%s1174_s3] ss:$0 sm:$0xff] }
  0x13   : > { %v960_v17 = vld [vmem:[%s1022_s29 + $0x70] sm:$0xff]   ;;  %v962_v19 = vld [vmem:[%s1022_s29 + $0x78] sm:$0xff]  }
  0x15   : > { %892 = vmatpush3.bf16.msra.mxu0 %v945_v2  ;;  %933 = vmatpush3.bf16.msra.mxu1 %v945_v2 }
  0x16   : > { %893 = vmatprep.subr.bf16.mxu0 %v946_v3  ;;  %930 = vmatprep.subr.bf16.mxu1 %v946_v3 }
  0x19   : > { %894 = vmatpush3.bf16.msra.mxu0 %v946_v3  ;;  %934 = vmatpush3.bf16.msra.mxu1 %v946_v3 }
  0x1c   : > { %896 = vmatmul.mubr.msk.bf16.vlgmr.msra.gmra.mxu0 %vm346_vm0, %v949_v6  ;;  %912 = vmatmul.mubr.msk.bf16.vlgmr.msra.gmra.mxu1 %vm346_vm0, %v950_v7 }
  0x1d   : > { %899 = vmatprep.mubr.msk.bf16.mxu0 %vm346_vm0, %v951_v8  ;;  %915 = vmatprep.mubr.msk.bf16.mxu1 %vm346_vm0, %v952_v9 }
  0x24   : > { %900 = vmatmul.mubr.msk.bf16.gmra.mxu0 %vm346_vm0, %v953_v10  ;;  %916 = vmatmul.mubr.msk.bf16.gmra.mxu1 %vm346_vm0, %v954_v11 }
  0x25   : > { %903 = vmatprep.mubr.msk.bf16.mxu0 %vm346_vm0, %v955_v12  ;;  %919 = vmatprep.mubr.msk.bf16.mxu1 %vm346_vm0, %v956_v13 }
  0x2c   : > { %904 = vmatmul.mubr.msk.bf16.gmra.mxu0 %vm346_vm0, %v957_v14  ;;  %920 = vmatmul.mubr.msk.bf16.gmra.mxu1 %vm346_vm0, %v958_v15 }
  0x2d   : > { %907 = vmatprep.mubr.msk.bf16.mxu0 %vm346_vm0, %v959_v16  ;;  %923 = vmatprep.mubr.msk.bf16.mxu1 %vm346_vm0, %v960_v17 }
  0x34   : > { %908 = vmatmul.mubr.msk.bf16.gmra.mxu0 %vm346_vm0, %v961_v18  ;;  %924 = vmatmul.mubr.msk.bf16.gmra.mxu1 %vm346_vm0, %v962_v19 }
  0xdc   : > { %v897_v21 = vpop.f32.mrf.mxu0  ;;  %v913_v23 = vpop.f32.mrf.mxu1 }
  0xdd   : > { %v565_v24 = vmul.f32 %v897_v21, %v1059_v20  ;;  %v581_v25 = vmul.f32 %v913_v23, %v1059_v20 }
  0xde   : > { %v429_v26 = vpop.f32.mrf.mxu0  ;;  %v493_v27 = vpop.f32.mrf.mxu1 }
  0xdf   : > { %v604_v28 = vadd.f32 %v1064_v22, %v565_v24  ;;  %v620_v29 = vadd.f32 %v1064_v22, %v581_v25  ;;  %v563_v30 = vmul.f32 %v1059_v20, %v429_v26  ;;  %v579_v31 = vmul.f32 %v1059_v20, %v493_v27 }
  0xe0   : > { %v898_v32 = vpop.f32.mrf.mxu0  ;;  %v914_v33 = vpop.f32.mrf.mxu1 }
  0xe1   : > { %vm636_vm1 = vcmp.ge.f32.partialorder %v604_v28, 0.0  ;;  %v668_v34 = vmul.f32 0.01, %v604_v28  ;;  %vm652_vm2 = vcmp.ge.f32.partialorder %v620_v29, 0.0  ;;  %v684_v35 = vmul.f32 0.01, %v620_v29 }
  0xe2   : > { %v602_v36 = vadd.f32 %v1064_v22, %v563_v30  ;;  %v618_v37 = vadd.f32 %v1064_v22, %v579_v31  ;;  %v566_v38 = vmul.f32 %v898_v32, %v1059_v20  ;;  %v582_v39 = vmul.f32 %v914_v33, %v1059_v20  ;;  %v432_v40 = vpop.f32.mrf.mxu0  ;;  %v496_v41 = vpop.f32.mrf.mxu1 }
  0xe3   : > { %v700_v42 = vsel %vm636_vm1, %v604_v28, %v668_v34  ;;  %v716_v43 = vsel %vm652_vm2, %v620_v29, %v684_v35  ;;  %v564_v44 = vmul.f32 %v1059_v20, %v432_v40  ;;  %v580_v45 = vmul.f32 %v1059_v20, %v496_v41 }
  0xe4   : > { %732 = vst [vmem:[%s1076_s11 + $0x10] sm:$0xff] %v700_v42  ;;  %748 = vst [vmem:[%s1076_s11 + $0x90] sm:$0xff] %v716_v43  ;;  %vm634_vm3 = vcmp.ge.f32.partialorder %v602_v36, 0.0  ;;  %v666_v46 = vmul.f32 0.01, %v602_v36  ;;  %vm650_vm4 = vcmp.ge.f32.partialorder %v618_v37, 0.0  ;;  %v901_v48 = vpop.f32.mrf.mxu0  ;;  %v917_v49 = vpop.f32.mrf.mxu1  ;;  %v605_v50 = vadd.f32 %v1064_v22, %v566_v38 }
  0xe5   : > { %v682_v47 = vmul.f32 0.01, %v618_v37  ;;  %v621_v51 = vadd.f32 %v1064_v22, %v582_v39  ;;  %v603_v52 = vadd.f32 %v1064_v22, %v564_v44  ;;  %v619_v53 = vadd.f32 %v1064_v22, %v580_v45 }
  0xe6   : > { %v698_v54 = vsel %vm634_vm3, %v602_v36, %v666_v46  ;;  %v569_v56 = vmul.f32 %v901_v48, %v1059_v20  ;;  %v585_v57 = vmul.f32 %v917_v49, %v1059_v20  ;;  %v445_v58 = vpop.f32.mrf.mxu0  ;;  %v509_v59 = vpop.f32.mrf.mxu1  ;;  %vm637_vm5 = vcmp.ge.f32.partialorder %v605_v50, 0.0 }
  0xe7   : > { %v714_v55 = vsel %vm650_vm4, %v618_v37, %v682_v47  ;;  %730 = vst [vmem:[%s1076_s11] sm:$0xff] %v698_v54  ;;  %v669_v60 = vmul.f32 0.01, %v605_v50  ;;  %vm653_vm6 = vcmp.ge.f32.partialorder %v621_v51, 0.0  ;;  %v685_v61 = vmul.f32 0.01, %v621_v51 }
  0xe8   : > { %746 = vst [vmem:[%s1076_s11 + $0x80] sm:$0xff] %v714_v55  ;;  %vm635_vm7 = vcmp.ge.f32.partialorder %v603_v52, 0.0  ;;  %v667_v62 = vmul.f32 0.01, %v603_v52  ;;  %vm651_vm8 = vcmp.ge.f32.partialorder %v619_v53, 0.0  ;;  %v902_v0 = vpop.f32.mrf.mxu0  ;;  %v918_v1 = vpop.f32.mrf.mxu1  ;;  %v608_v4 = vadd.f32 %v1064_v22, %v569_v56 }
  0xe9   : > { %v683_v63 = vmul.f32 0.01, %v619_v53  ;;  %v701_v2 = vsel %vm637_vm5, %v605_v50, %v669_v60  ;;  %v717_v3 = vsel %vm653_vm6, %v621_v51, %v685_v61  ;;  %v624_v5 = vadd.f32 %v1064_v22, %v585_v57 }
  0xea   : > { %733 = vst [vmem:[%s1076_s11 + $0x18] sm:$0xff] %v701_v2  ;;  %749 = vst [vmem:[%s1076_s11 + $0x98] sm:$0xff] %v717_v3  ;;  %v699_v6 = vsel %vm635_vm7, %v603_v52, %v667_v62  ;;  %v567_v8 = vmul.f32 %v1059_v20, %v445_v58  ;;  %v583_v9 = vmul.f32 %v1059_v20, %v509_v59  ;;  %v448_v10 = vpop.f32.mrf.mxu0  ;;  %v512_v11 = vpop.f32.mrf.mxu1  ;;  %vm640_vm9 = vcmp.ge.f32.partialorder %v608_v4, 0.0 }
  0xeb   : > { %v715_v7 = vsel %vm651_vm8, %v619_v53, %v683_v63  ;;  %731 = vst [vmem:[%s1076_s11 + $0x8] sm:$0xff] %v699_v6  ;;  %v672_v12 = vmul.f32 0.01, %v608_v4  ;;  %vm656_vm10 = vcmp.ge.f32.partialorder %v624_v5, 0.0  ;;  %v688_v13 = vmul.f32 0.01, %v624_v5 }
  0xec   : > { %747 = vst [vmem:[%s1076_s11 + $0x88] sm:$0xff] %v715_v7  ;;  %v606_v14 = vadd.f32 %v1064_v22, %v567_v8  ;;  %v622_v15 = vadd.f32 %v1064_v22, %v583_v9  ;;  %v570_v16 = vmul.f32 %v902_v0, %v1059_v20  ;;  %v586_v17 = vmul.f32 %v918_v1, %v1059_v20  ;;  %v905_v18 = vpop.f32.mrf.mxu0  ;;  %v921_v19 = vpop.f32.mrf.mxu1 }
  0xed   : > { %v704_v21 = vsel %vm640_vm9, %v608_v4, %v672_v12  ;;  %v720_v23 = vsel %vm656_vm10, %v624_v5, %v688_v13  ;;  %v568_v24 = vmul.f32 %v1059_v20, %v448_v10  ;;  %v584_v25 = vmul.f32 %v1059_v20, %v512_v11 }
  0xee   : > { %736 = vst [vmem:[%s1076_s11 + $0x30] sm:$0xff] %v704_v21  ;;  %752 = vst [vmem:[%s1076_s11 + $0xb0] sm:$0xff] %v720_v23  ;;  %vm638_vm11 = vcmp.ge.f32.partialorder %v606_v14, 0.0  ;;  %v670_v26 = vmul.f32 0.01, %v606_v14  ;;  %vm654_vm12 = vcmp.ge.f32.partialorder %v622_v15, 0.0  ;;  %v461_v28 = vpop.f32.mrf.mxu0  ;;  %v525_v29 = vpop.f32.mrf.mxu1  ;;  %v609_v30 = vadd.f32 %v1064_v22, %v570_v16 }
  0xef   : > { %v686_v27 = vmul.f32 0.01, %v622_v15  ;;  %v625_v31 = vadd.f32 %v1064_v22, %v586_v17  ;;  %v607_v32 = vadd.f32 %v1064_v22, %v568_v24  ;;  %v623_v33 = vadd.f32 %v1064_v22, %v584_v25 }
  0xf0   : > { %v702_v34 = vsel %vm638_vm11, %v606_v14, %v670_v26  ;;  %v573_v36 = vmul.f32 %v905_v18, %v1059_v20  ;;  %v589_v37 = vmul.f32 %v921_v19, %v1059_v20  ;;  %v906_v38 = vpop.f32.mrf.mxu0  ;;  %v922_v39 = vpop.f32.mrf.mxu1  ;;  %vm641_vm13 = vcmp.ge.f32.partialorder %v609_v30, 0.0 }
  0xf1   : > { %v718_v35 = vsel %vm654_vm12, %v622_v15, %v686_v27  ;;  %734 = vst [vmem:[%s1076_s11 + $0x20] sm:$0xff] %v702_v34  ;;  %v673_v40 = vmul.f32 0.01, %v609_v30  ;;  %vm657_vm14 = vcmp.ge.f32.partialorder %v625_v31, 0.0  ;;  %v689_v41 = vmul.f32 0.01, %v625_v31 }
  0xf2   : > { %750 = vst [vmem:[%s1076_s11 + $0xa0] sm:$0xff] %v718_v35  ;;  %vm639_vm15 = vcmp.ge.f32.partialorder %v607_v32, 0.0  ;;  %v671_v42 = vmul.f32 0.01, %v607_v32  ;;  %vm655_vm0 = vcmp.ge.f32.partialorder %v623_v33, 0.0  ;;  %v464_v44 = vpop.f32.mrf.mxu0  ;;  %v528_v45 = vpop.f32.mrf.mxu1  ;;  %v612_v48 = vadd.f32 %v1064_v22, %v573_v36 }
  0xf3   : > { %v687_v43 = vmul.f32 0.01, %v623_v33  ;;  %v705_v46 = vsel %vm641_vm13, %v609_v30, %v673_v40  ;;  %v721_v47 = vsel %vm657_vm14, %v625_v31, %v689_v41  ;;  %v628_v49 = vadd.f32 %v1064_v22, %v589_v37 }
  0xf4   : > { %737 = vst [vmem:[%s1076_s11 + $0x38] sm:$0xff] %v705_v46  ;;  %753 = vst [vmem:[%s1076_s11 + $0xb8] sm:$0xff] %v721_v47  ;;  %v703_v50 = vsel %vm639_vm15, %v607_v32, %v671_v42  ;;  %v571_v52 = vmul.f32 %v1059_v20, %v461_v28  ;;  %v587_v53 = vmul.f32 %v1059_v20, %v525_v29  ;;  %v909_v54 = vpop.f32.mrf.mxu0  ;;  %v925_v55 = vpop.f32.mrf.mxu1  ;;  %vm644_vm1 = vcmp.ge.f32.partialorder %v612_v48, 0.0 }
  0xf5   : > { %v719_v51 = vsel %vm655_vm0, %v623_v33, %v687_v43  ;;  %735 = vst [vmem:[%s1076_s11 + $0x28] sm:$0xff] %v703_v50  ;;  %v676_v56 = vmul.f32 0.01, %v612_v48  ;;  %vm660_vm2 = vcmp.ge.f32.partialorder %v628_v49, 0.0  ;;  %v692_v57 = vmul.f32 0.01, %v628_v49 }
  0xf6   : > { %751 = vst [vmem:[%s1076_s11 + $0xa8] sm:$0xff] %v719_v51  ;;  %v610_v58 = vadd.f32 %v1064_v22, %v571_v52  ;;  %v626_v59 = vadd.f32 %v1064_v22, %v587_v53  ;;  %v574_v60 = vmul.f32 %v906_v38, %v1059_v20  ;;  %v590_v61 = vmul.f32 %v922_v39, %v1059_v20  ;;  %v477_v62 = vpop.f32.mrf.mxu0  ;;  %v541_v63 = vpop.f32.mrf.mxu1 }
  0xf7   : > { %v708_v0 = vsel %vm644_vm1, %v612_v48, %v676_v56  ;;  %v724_v1 = vsel %vm660_vm2, %v628_v49, %v692_v57  ;;  %v572_v2 = vmul.f32 %v1059_v20, %v464_v44  ;;  %v588_v3 = vmul.f32 %v1059_v20, %v528_v45 }
  0xf8   : > { %740 = vst [vmem:[%s1076_s11 + $0x50] sm:$0xff] %v708_v0  ;;  %756 = vst [vmem:[%s1076_s11 + $0xd0] sm:$0xff] %v724_v1  ;;  %vm642_vm3 = vcmp.ge.f32.partialorder %v610_v58, 0.0  ;;  %v674_v4 = vmul.f32 0.01, %v610_v58  ;;  %vm658_vm4 = vcmp.ge.f32.partialorder %v626_v59, 0.0  ;;  %v613_v6 = vadd.f32 %v1064_v22, %v574_v60  ;;  %v910_v14 = vpop.f32.mrf.mxu0  ;;  %v926_v15 = vpop.f32.mrf.mxu1 }
  0xf9   : > { %v690_v5 = vmul.f32 0.01, %v626_v59  ;;  %v629_v7 = vadd.f32 %v1064_v22, %v590_v61  ;;  %v611_v8 = vadd.f32 %v1064_v22, %v572_v2  ;;  %v627_v9 = vadd.f32 %v1064_v22, %v588_v3 }
  0xfa   : > { %v706_v10 = vsel %vm642_vm3, %v610_v58, %v674_v4  ;;  %v577_v12 = vmul.f32 %v909_v54, %v1059_v20  ;;  %v593_v13 = vmul.f32 %v925_v55, %v1059_v20  ;;  %vm645_vm5 = vcmp.ge.f32.partialorder %v613_v6, 0.0  ;;  %v480_v30 = vpop.f32.mrf.mxu0  ;;  %v544_v31 = vpop.f32.mrf.mxu1 }
  0xfb   : > { %v722_v11 = vsel %vm658_vm4, %v626_v59, %v690_v5  ;;  %738 = vst [vmem:[%s1076_s11 + $0x40] sm:$0xff] %v706_v10  ;;  %v677_v16 = vmul.f32 0.01, %v613_v6  ;;  %vm661_vm6 = vcmp.ge.f32.partialorder %v629_v7, 0.0  ;;  %v693_v17 = vmul.f32 0.01, %v629_v7 }
  0xfc   : > { %754 = vst [vmem:[%s1076_s11 + $0xc0] sm:$0xff] %v722_v11  ;;  %vm643_vm7 = vcmp.ge.f32.partialorder %v611_v8, 0.0  ;;  %v675_v18 = vmul.f32 0.01, %v611_v8  ;;  %vm659_vm8 = vcmp.ge.f32.partialorder %v627_v9, 0.0  ;;  %v616_v24 = vadd.f32 %v1064_v22, %v577_v12 }
  0xfd   : > { %v691_v19 = vmul.f32 0.01, %v627_v9  ;;  %v709_v21 = vsel %vm645_vm5, %v613_v6, %v677_v16  ;;  %v725_v23 = vsel %vm661_vm6, %v629_v7, %v693_v17  ;;  %v632_v25 = vadd.f32 %v1064_v22, %v593_v13 }
  0xfe   : > { %741 = vst [vmem:[%s1076_s11 + $0x58] sm:$0xff] %v709_v21  ;;  %757 = vst [vmem:[%s1076_s11 + $0xd8] sm:$0xff] %v725_v23  ;;  %v707_v26 = vsel %vm643_vm7, %v611_v8, %v675_v18  ;;  %v575_v28 = vmul.f32 %v1059_v20, %v477_v62  ;;  %v591_v29 = vmul.f32 %v1059_v20, %v541_v63  ;;  %vm648_vm9 = vcmp.ge.f32.partialorder %v616_v24, 0.0 }
  0xff   : > { %v723_v27 = vsel %vm659_vm8, %v627_v9, %v691_v19  ;;  %739 = vst [vmem:[%s1076_s11 + $0x48] sm:$0xff] %v707_v26  ;;  %v680_v32 = vmul.f32 0.01, %v616_v24  ;;  %vm664_vm10 = vcmp.ge.f32.partialorder %v632_v25, 0.0  ;;  %v696_v33 = vmul.f32 0.01, %v632_v25 }
 0x100   : > { %755 = vst [vmem:[%s1076_s11 + $0xc8] sm:$0xff] %v723_v27  ;;  %v614_v34 = vadd.f32 %v1064_v22, %v575_v28  ;;  %v630_v35 = vadd.f32 %v1064_v22, %v591_v29  ;;  %v578_v36 = vmul.f32 %v910_v14, %v1059_v20  ;;  %v594_v37 = vmul.f32 %v926_v15, %v1059_v20 }
 0x101   : > { %v712_v38 = vsel %vm648_vm9, %v616_v24, %v680_v32  ;;  %v728_v39 = vsel %vm664_vm10, %v632_v25, %v696_v33  ;;  %v576_v40 = vmul.f32 %v1059_v20, %v480_v30  ;;  %v592_v41 = vmul.f32 %v1059_v20, %v544_v31 }
 0x102   : > { %744 = vst [vmem:[%s1076_s11 + $0x70] sm:$0xff] %v712_v38  ;;  %760 = vst [vmem:[%s1076_s11 + $0xf0] sm:$0xff] %v728_v39  ;;  %vm646_vm11 = vcmp.ge.f32.partialorder %v614_v34, 0.0  ;;  %v678_v42 = vmul.f32 0.01, %v614_v34  ;;  %vm662_vm12 = vcmp.ge.f32.partialorder %v630_v35, 0.0  ;;  %v617_v44 = vadd.f32 %v1064_v22, %v578_v36 }
 0x103   : > { %v694_v43 = vmul.f32 0.01, %v630_v35  ;;  %v633_v45 = vadd.f32 %v1064_v22, %v594_v37  ;;  %v615_v46 = vadd.f32 %v1064_v22, %v576_v40  ;;  %v631_v47 = vadd.f32 %v1064_v22, %v592_v41 }
 0x104   : > { %v710_v48 = vsel %vm646_vm11, %v614_v34, %v678_v42  ;;  %vm649_vm13 = vcmp.ge.f32.partialorder %v617_v44, 0.0  ;;  %v681_v20 = vmul.f32 0.01, %v617_v44 }
 0x105   : > { %v726_v49 = vsel %vm662_vm12, %v630_v35, %v694_v43  ;;  %742 = vst [vmem:[%s1076_s11 + $0x60] sm:$0xff] %v710_v48  ;;  %vm665_vm14 = vcmp.ge.f32.partialorder %v633_v45, 0.0  ;;  %v697_v50 = vmul.f32 0.01, %v633_v45  ;;  %vm647_vm15 = vcmp.ge.f32.partialorder %v615_v46, 0.0 }
 0x106   : > { %758 = vst [vmem:[%s1076_s11 + $0xe0] sm:$0xff] %v726_v49  ;;  %v679_v51 = vmul.f32 0.01, %v615_v46  ;;  %vm663_vm0 = vcmp.ge.f32.partialorder %v631_v47, 0.0  ;;  %v695_v52 = vmul.f32 0.01, %v631_v47  ;;  %v713_v53 = vsel %vm649_vm13, %v617_v44, %v681_v20 }
 0x107   : > { %v729_v54 = vsel %vm665_vm14, %v633_v45, %v697_v50  ;;  %745 = vst [vmem:[%s1076_s11 + $0x78] sm:$0xff] %v713_v53 }
 0x108   : > { %761 = vst [vmem:[%s1076_s11 + $0xf8] sm:$0xff] %v729_v54  ;;  %v711_v22 = vsel %vm647_vm15, %v615_v46, %v679_v51  ;;  %v727_v55 = vsel %vm663_vm0, %v631_v47, %v695_v52 }
 0x109   : > { %743 = vst [vmem:[%s1076_s11 + $0x68] sm:$0xff] %v711_v22  ;;  %759 = vst [vmem:[%s1076_s11 + $0xe8] sm:$0xff] %v727_v55 }
 0x10a PF: > { %s14_s15 = sadd.s32 1, %s969_s15  }
 0x10b   : > { %p11_p4 = scmp.ge.s32.totalorder %s14_s15, 5  }
 0x10d   :  { %13 = sbr.rel (!%p11_p4) target bundleno = 1 (0x1), region = 66 }

</bundles_post_ra>
